<compile_context>
chip_gen: v7x
topology: tpu7x:2x2x1
jax: 0.10.0
libtpu: 0.0.40
codegen_flags: <defaults>
</compile_context>

<pallas_src>
import functools

import jax
import jax.numpy as jnp
from jax.experimental import pallas as pl
from jax.experimental.pallas import tpu as pltpu


def _nll_kernel(pred_ref, tgt_ref, loss_ref, cnt_ref, *,
                ignore_index, total_rows, tile_m, inner_tiles):
    g = pl.program_id(0)   # parallel chunk
    t = pl.program_id(1)   # sequential tile within chunk

    @pl.when(t == 0)
    def _():
        loss_ref[...] = jnp.zeros_like(loss_ref)
        cnt_ref[...] = jnp.zeros_like(cnt_ref)

    pred = pred_ref[...].astype(jnp.float32)   # (TM, C) log-probs
    tgt = tgt_ref[...]                         # (TM, 1) int32 labels

    tm, c = pred.shape
    classes = jax.lax.broadcasted_iota(jnp.int32, (1, c), 1)          # (1, C)
    # Logical row index (from the logical step, NOT the clamped block index),
    # so duplicated past-the-end steps are fully masked out.
    row = (g * inner_tiles + t) * tile_m + jax.lax.broadcasted_iota(
        jnp.int32, (tm, 1), 0)                                        # (TM, 1)

    # one-hot gather + ignore_index + ragged-tail mask, fused into one select
    select = (tgt == classes) & (tgt != ignore_index) & (row < total_rows)

    # jnp.where so garbage in ragged tail rows (stale VMEM, possibly NaN/Inf)
    # can never poison the sums.
    loss_terms = jnp.where(select, -pred, 0.0)                        # (TM, C)
    cnt_terms = jnp.where(select, 1.0, 0.0)                           # (TM, C)

    # per-class partial sums; the class-weight multiply and the cross-lane
    # reduction to a scalar are deferred to the wrapper.
    loss_ref[...] += jnp.sum(loss_terms, axis=0, keepdims=True)       # (1, C)
    cnt_ref[...] += jnp.sum(cnt_terms, axis=0, keepdims=True)         # (1, C)


def nll_loss_pallas(pred, target, class_weights=None, ignore_index=None,
                    *, tile_m=4096, num_chunks=2):
    """Pallas equivalent of F.nll_loss(pred, target, weight, ignore_index,
    reduction='mean').

    pred:   [B, N, C] or [M, C] log-probabilities (f32 or bf16)
    target: [B, N] or [M] integer labels
    """
    if pred.ndim == 3:
        pred = pred.reshape(-1, pred.shape[-1])
    target = target.reshape(-1, 1).astype(jnp.int32)

    M, C = pred.shape
    if class_weights is None:
        w = jnp.ones((C,), jnp.float32)
    else:
        w = class_weights.reshape(C).astype(jnp.float32)

    ii = -100 if ignore_index is None else int(ignore_index)

    # Row tile: multiple of 8 (sublanes), no larger than the rounded-up row
    # count.  VMEM cost after lane padding is ~512 B/row per buffer for pred
    # and for target, double-buffered -> ~2 KiB * tile_m total.
    tile_m = max(8, (int(tile_m) + 7) // 8 * 8)
    tile_m = min(tile_m, (M + 7) // 8 * 8)

    num_tiles = pl.cdiv(M, tile_m)
    G = max(1, min(int(num_chunks), num_tiles))   # "parallel" chunks (megacore)
    T = pl.cdiv(num_tiles, G)                     # sequential tiles per chunk
    last = num_tiles - 1

    def row_block(g, t):
        # Clamp: steps past the end re-read the last block and are fully
        # masked by the in-kernel `row < total_rows` check.
        return (jnp.minimum(g * T + t, last), 0)

    kernel = functools.partial(_nll_kernel, ignore_index=ii, total_rows=M,
                               tile_m=tile_m, inner_tiles=T)

    loss_p, cnt_p = pl.pallas_call(
        kernel,
        out_shape=(jax.ShapeDtypeStruct((G, 1, C), jnp.float32),
                   jax.ShapeDtypeStruct((G, 1, C), jnp.float32)),
        grid_spec=pltpu.PrefetchScalarGridSpec(
            num_scalar_prefetch=0,
            grid=(G, T),
            in_specs=[
                pl.BlockSpec((tile_m, C), row_block),
                pl.BlockSpec((tile_m, 1), row_block),
            ],
            out_specs=[
                pl.BlockSpec((None, 1, C), lambda g, t: (g, 0, 0)),
                pl.BlockSpec((None, 1, C), lambda g, t: (g, 0, 0)),
            ],
        ),
        compiler_params=pltpu.CompilerParams(
            dimension_semantics=("parallel", "arbitrary"),
            vmem_limit_bytes=32 * 1024 * 1024),
    )(pred, target)

    # reduction='mean': sum_i(w_{t_i} * nll_i) / sum_i(w_{t_i}) over
    # non-ignored rows == sum_c w_c * loss_c / sum_c w_c * count_c.
    # (If every row is ignored this is 0/0 = NaN, matching F.nll_loss.)
    w_b = w.reshape(1, 1, C)
    return jnp.sum(loss_p * w_b) / jnp.sum(cnt_p * w_b)


def nll_loss_ref(pred, target, class_weights=None, ignore_index=None):
    if pred.ndim == 3:
        pred = pred.reshape(-1, pred.shape[-1])
    target = target.reshape(-1).astype(jnp.int32)
    C = pred.shape[-1]
    if class_weights is None:
        class_weights = jnp.ones((C,), jnp.float32)
    ii = -100 if ignore_index is None else int(ignore_index)
    valid = target != ii
    t = jnp.where(valid, target, 0)
    logp = jnp.take_along_axis(pred.astype(jnp.float32), t[:, None], axis=1)[:, 0]
    w = class_weights.astype(jnp.float32)[t] * valid.astype(jnp.float32)
    return jnp.sum(-logp * w) / jnp.sum(w)


if __name__ == "__main__":
    key = jax.random.PRNGKey(0)
    B, N, C = 2, 64, 13          # small sem-seg style shapes: M = B*N = 128
    k1, k2, k3 = jax.random.split(key, 3)

    logits = jax.random.normal(k1, (B, N, C), dtype=jnp.float32)
    pred = jax.nn.log_softmax(logits, axis=-1)        # log-probabilities
    target = jax.random.randint(k2, (B, N), 0, C, dtype=jnp.int32)
    class_weights = jax.random.uniform(k3, (C,), dtype=jnp.float32) + 0.5

    # 1) no weights, default ignore_index (single tile, G=1)
    loss = jax.block_until_ready(nll_loss_pallas(pred, target))
    ref = nll_loss_ref(pred, target)
    assert jnp.allclose(loss, ref, rtol=1e-5, atol=1e-5), (loss, ref)

    # 2) class weights + ignore_index
    target_ig = target.at[0, :5].set(3)
    loss_w = jax.block_until_ready(
        nll_loss_pallas(pred, target_ig, class_weights, ignore_index=3))
    ref_w = nll_loss_ref(pred, target_ig, class_weights, ignore_index=3)
    assert jnp.allclose(loss_w, ref_w, rtol=1e-5, atol=1e-5), (loss_w, ref_w)

    # 3) small tile to exercise the multi-tile grid, the "parallel" chunk
    #    axis, the ragged-tail mask and the clamped past-the-end step.
    loss_s = jax.block_until_ready(
        nll_loss_pallas(pred, target_ig, class_weights, ignore_index=3,
                        tile_m=48))
    assert jnp.allclose(loss_s, ref_w, rtol=1e-5, atol=1e-5), (loss_s, ref_w)

    # 4) bf16 log-probs (halved HBM stream), pre-flattened [M, C] input
    pred_bf = pred.reshape(-1, C).astype(jnp.bfloat16)
    loss_bf = jax.block_until_ready(
        nll_loss_pallas(pred_bf, target_ig.reshape(-1), class_weights,
                        ignore_index=3))
    ref_bf = nll_loss_ref(pred_bf, target_ig, class_weights, ignore_index=3)
    assert jnp.allclose(loss_bf, ref_bf, rtol=1e-2, atol=1e-2), (loss_bf, ref_bf)

    print("KERNEL_OK")
</pallas_src>

<mosaic_0001>
module attributes {stable_mosaic.version = 11 : i64} {
  func.func @_nll_kernel(%arg0: i32, %arg1: i32, %arg2: memref<128x13xf32, #tpu.memory_space<vmem>>, %arg3: memref<128x1xi32, #tpu.memory_space<vmem>>, %arg4: memref<1x1x13xf32, #tpu.memory_space<vmem>>, %arg5: memref<1x1x13xf32, #tpu.memory_space<vmem>>) attributes {dimension_semantics = [#tpu.dimension_semantics<parallel>, #tpu.dimension_semantics<arbitrary>], iteration_bounds = array<i64: 1, 1>, scalar_prefetch = 0 : i64, scratch_operands = 0 : i64, tpu.core_type = #tpu.core_type<tc>, window_params = [{transform_indices = @transform_0, window_bounds = array<i64: 128, 13>}, {transform_indices = @transform_1, window_bounds = array<i64: 128, 1>}, {transform_indices = @transform_2, window_bounds = array<i64: 1, 1, 13>}, {transform_indices = @transform_3, window_bounds = array<i64: 1, 1, 13>}]} {
    %c0_i32 = arith.constant 0 : i32
    %0 = arith.cmpi eq, %arg1, %c0_i32 : i32
    %1 = arith.extui %0 : i1 to i32
    %c0_i32_0 = arith.constant 0 : i32
    %2 = arith.cmpi ne, %1, %c0_i32_0 : i32
    scf.if %2 {
      %cst_22 = arith.constant 0.000000e+00 : f32
      %46 = vector.broadcast %cst_22 : f32 to vector<1x13xf32>
      %c0_23 = arith.constant 0 : index
      %c0_24 = arith.constant 0 : index
      %c0_25 = arith.constant 0 : index
      %47 = vector.load %arg4[%c0_23, %c0_24, %c0_25] : memref<1x1x13xf32, #tpu.memory_space<vmem>>, vector<1x1x13xf32>
      %48 = vector.shape_cast %47 : vector<1x1x13xf32> to vector<1x13xf32>
      %49 = vector.shape_cast %46 : vector<1x13xf32> to vector<1x1x13xf32>
      tpu.vector_store %arg4[%c0_23, %c0_24, %c0_25], %49 {strides = array<i32>} : memref<1x1x13xf32, #tpu.memory_space<vmem>>, vector<1x1x13xf32>,
      %cst_26 = arith.constant 0.000000e+00 : f32
      %50 = vector.broadcast %cst_26 : f32 to vector<1x13xf32>
      %c0_27 = arith.constant 0 : index
      %c0_28 = arith.constant 0 : index
      %c0_29 = arith.constant 0 : index
      %51 = vector.load %arg5[%c0_27, %c0_28, %c0_29] : memref<1x1x13xf32, #tpu.memory_space<vmem>>, vector<1x1x13xf32>
      %52 = vector.shape_cast %51 : vector<1x1x13xf32> to vector<1x13xf32>
      %53 = vector.shape_cast %50 : vector<1x13xf32> to vector<1x1x13xf32>
      tpu.vector_store %arg5[%c0_27, %c0_28, %c0_29], %53 {strides = array<i32>} : memref<1x1x13xf32, #tpu.memory_space<vmem>>, vector<1x1x13xf32>,
    } else {
    }
    %c0 = arith.constant 0 : index
    %c0_1 = arith.constant 0 : index
    %3 = vector.load %arg2[%c0, %c0_1] : memref<128x13xf32, #tpu.memory_space<vmem>>, vector<128x13xf32>
    %c0_2 = arith.constant 0 : index
    %c0_3 = arith.constant 0 : index
    %4 = vector.load %arg3[%c0_2, %c0_3] : memref<128x1xi32, #tpu.memory_space<vmem>>, vector<128x1xi32>
    %5 = tpu.iota {dimensions = array<i32: 1>} : vector<1x13xi32>
    %c1_i32 = arith.constant 1 : i32
    %6 = arith.muli %arg0, %c1_i32 : i32
    %7 = arith.addi %6, %arg1 : i32
    %c128_i32 = arith.constant 128 : i32
    %8 = arith.muli %7, %c128_i32 : i32
    %9 = tpu.iota {dimensions = array<i32: 0>} : vector<128x1xi32>
    %10 = vector.broadcast %8 : i32 to vector<128x1xi32>
    %11 = arith.addi %10, %9 : vector<128x1xi32>
    %12 = vector.broadcast %4 : vector<128x1xi32> to vector<128x13xi32>
    %13 = vector.broadcast %5 : vector<1x13xi32> to vector<128x13xi32>
    %14 = arith.cmpi eq, %12, %13 : vector<128x13xi32>
    %c-100_i32 = arith.constant -100 : i32
    %15 = vector.broadcast %c-100_i32 : i32 to vector<128x1xi32>
    %16 = arith.cmpi ne, %4, %15 : vector<128x1xi32>
    %17 = vector.broadcast %16 : vector<128x1xi1> to vector<128x13xi1>
    %18 = arith.andi %14, %17 : vector<128x13xi1>
    %c128_i32_4 = arith.constant 128 : i32
    %19 = vector.broadcast %c128_i32_4 : i32 to vector<128x1xi32>
    %20 = arith.cmpi slt, %11, %19 : vector<128x1xi32>
    %21 = vector.broadcast %20 : vector<128x1xi1> to vector<128x13xi1>
    %22 = arith.andi %18, %21 : vector<128x13xi1>
    %cst = arith.constant 0.000000e+00 : f32
    %23 = vector.broadcast %cst : f32 to vector<128x13xf32>
    %24 = arith.subf %23, %3 : vector<128x13xf32>
    %cst_5 = arith.constant 0.000000e+00 : f32
    %25 = vector.broadcast %cst_5 : f32 to vector<128x13xf32>
    %26 = arith.select %22, %24, %25 : vector<128x13xi1>, vector<128x13xf32>
    %cst_6 = arith.constant 1.000000e+00 : f32
    %cst_7 = arith.constant 0.000000e+00 : f32
    %27 = vector.broadcast %cst_6 : f32 to vector<128x13xf32>
    %28 = vector.broadcast %cst_7 : f32 to vector<128x13xf32>
    %29 = arith.select %22, %27, %28 : vector<128x13xi1>, vector<128x13xf32>
    %c0_8 = arith.constant 0 : index
    %c0_9 = arith.constant 0 : index
    %c0_10 = arith.constant 0 : index
    %30 = vector.load %arg4[%c0_8, %c0_9, %c0_10] : memref<1x1x13xf32, #tpu.memory_space<vmem>>, vector<1x1x13xf32>
    %31 = vector.shape_cast %30 : vector<1x1x13xf32> to vector<1x13xf32>
    %cst_11 = arith.constant dense<0.000000e+00> : vector<13xf32>
    %32 = vector.multi_reduction <add>, %26, %cst_11 [0] : vector<128x13xf32> to vector<13xf32>
    %33 = vector.shape_cast %32 : vector<13xf32> to vector<1x13xf32>
    %34 = arith.addf %31, %33 : vector<1x13xf32>
    %c0_12 = arith.constant 0 : index
    %c0_13 = arith.constant 0 : index
    %c0_14 = arith.constant 0 : index
    %35 = vector.load %arg4[%c0_12, %c0_13, %c0_14] : memref<1x1x13xf32, #tpu.memory_space<vmem>>, vector<1x1x13xf32>
    %36 = vector.shape_cast %35 : vector<1x1x13xf32> to vector<1x13xf32>
    %37 = vector.shape_cast %34 : vector<1x13xf32> to vector<1x1x13xf32>
    tpu.vector_store %arg4[%c0_12, %c0_13, %c0_14], %37 {strides = array<i32>} : memref<1x1x13xf32, #tpu.memory_space<vmem>>, vector<1x1x13xf32>,
    %c0_15 = arith.constant 0 : index
    %c0_16 = arith.constant 0 : index
    %c0_17 = arith.constant 0 : index
    %38 = vector.load %arg5[%c0_15, %c0_16, %c0_17] : memref<1x1x13xf32, #tpu.memory_space<vmem>>, vector<1x1x13xf32>
    %39 = vector.shape_cast %38 : vector<1x1x13xf32> to vector<1x13xf32>
    %cst_18 = arith.constant dense<0.000000e+00> : vector<13xf32>
    %40 = vector.multi_reduction <add>, %29, %cst_18 [0] : vector<128x13xf32> to vector<13xf32>
    %41 = vector.shape_cast %40 : vector<13xf32> to vector<1x13xf32>
    %42 = arith.addf %39, %41 : vector<1x13xf32>
    %c0_19 = arith.constant 0 : index
    %c0_20 = arith.constant 0 : index
    %c0_21 = arith.constant 0 : index
    %43 = vector.load %arg5[%c0_19, %c0_20, %c0_21] : memref<1x1x13xf32, #tpu.memory_space<vmem>>, vector<1x1x13xf32>
    %44 = vector.shape_cast %43 : vector<1x1x13xf32> to vector<1x13xf32>
    %45 = vector.shape_cast %42 : vector<1x13xf32> to vector<1x1x13xf32>
    tpu.vector_store %arg5[%c0_19, %c0_20, %c0_21], %45 {strides = array<i32>} : memref<1x1x13xf32, #tpu.memory_space<vmem>>, vector<1x1x13xf32>,
    return
  }
  func.func @transform_0(%arg0: i32, %arg1: i32) -> (i32, i32) {
    %c1_i32 = arith.constant 1 : i32
    %0 = arith.muli %arg0, %c1_i32 : i32
    %1 = arith.addi %0, %arg1 : i32
    %c0_i32 = arith.constant 0 : i32
    %2 = arith.minsi %1, %c0_i32 : i32
    %c0_i32_0 = arith.constant 0 : i32
    %c0_i32_1 = arith.constant 0 : i32
    return %2, %c0_i32_0 : i32, i32
  }
  func.func @transform_1(%arg0: i32, %arg1: i32) -> (i32, i32) {
    %c1_i32 = arith.constant 1 : i32
    %0 = arith.muli %arg0, %c1_i32 : i32
    %1 = arith.addi %0, %arg1 : i32
    %c0_i32 = arith.constant 0 : i32
    %2 = arith.minsi %1, %c0_i32 : i32
    %c0_i32_0 = arith.constant 0 : i32
    %c0_i32_1 = arith.constant 0 : i32
    return %2, %c0_i32_0 : i32, i32
  }
  func.func @transform_2(%arg0: i32, %arg1: i32) -> (i32, i32, i32) {
    %c0_i32 = arith.constant 0 : i32
    %c0_i32_0 = arith.constant 0 : i32
    %c0_i32_1 = arith.constant 0 : i32
    return %arg0, %c0_i32, %c0_i32_0 : i32, i32, i32
  }
  func.func @transform_3(%arg0: i32, %arg1: i32) -> (i32, i32, i32) {
    %c0_i32 = arith.constant 0 : i32
    %c0_i32_0 = arith.constant 0 : i32
    %c0_i32_1 = arith.constant 0 : i32
    return %arg0, %c0_i32, %c0_i32_0 : i32, i32, i32
  }
}

</mosaic_0001>

<bundles_post_ra>
// kernel: tpu_custom_call.1
= control target key start
LH: loop header
LB: loop body
LE: loop exit
PB: predicated region body
PF: predicated region fallthrough
CT: control target
= control target key end

     0   :  { %9 = vsyncpa [#allocation3], 0  ;;  %v620_v2 = vmov 0   ;;  %s881_s0 = inlined_call_operand.vmem [shape: f32[128,13], index: 0, kind: input, shape index: {}]   ;;  %s882_s1 = inlined_call_operand.vmem [shape: s32[128,1], index: 1, kind: input, shape index: {}]   ;;  %s883_s2 = inlined_call_operand.hbm [shape: f32[1,1,13], index: 2, kind: output, shape index: {0}]   ;;  %s884_s3 = inlined_call_operand.hbm [shape: f32[1,1,13], index: 3, kind: output, shape index: {1}]  }
   0x1   :  { %v104_v0 = vld [vmem:[%s882_s1 + $0x10] sm:$0xff]  ;;  %v102_v1 = vld [vmem:[%s882_s1] sm:$0xff]  ;;  %571 = vset.pattern.permute.xlu1 %v620_v2  ;;  %570 = vset.pattern.permute.xlu0 %v620_v2  ;;  %v105_v3 = vld [vmem:[%s882_s1 + $0x18] sm:$0xff] }
   0x2   :  { %163 = vperm.xlu1 %571, %v104_v0   ;;  %157 = vperm.xlu0 %570, %v102_v1   ;;  %v103_v4 = vld [vmem:[%s882_s1 + $0x8] sm:$0xff]  ;;  %vm220_vm0 = vcmp.ne.s32.totalorder %v102_v1, 4294967196 }
   0x3   :  { %vm221_vm1 = vcmp.ne.s32.totalorder %v103_v4, 4294967196  ;;  %v236_v6 = vsel %vm220_vm0, 1, %v620_v2 }
   0x4   :  { %v237_v5 = vsel %vm221_vm1, 1, %v620_v2 }
   0x6   :  { %166 = vperm.xlu1 %571, %v105_v3   ;;  %160 = vperm.xlu0 %570, %v103_v4  }
   0x7   :  { %10 = vsyncpa [#allocation5], 0  ;;  %vm222_vm2 = vcmp.ne.s32.totalorder %v104_v0, 4294967196  ;;  %vm223_vm3 = vcmp.ne.s32.totalorder %v105_v3, 4294967196  ;;  %v106_v7 = vld [vmem:[%s882_s1 + $0x20] sm:$0xff]  ;;  %v107_v10 = vld [vmem:[%s882_s1 + $0x28] sm:$0xff]  ;;  %v118_v40 = vlaneseq }
   0x8   :  { %v239_v8 = vsel %vm223_vm3, 1, %v620_v2  ;;  %v238_v9 = vsel %vm222_vm2, 1, %v620_v2  ;;  %vm224_vm4 = vcmp.ne.s32.totalorder %v106_v7, 4294967196  ;;  %vm225_vm5 = vcmp.ne.s32.totalorder %v107_v10, 4294967196  ;;  %v108_v12 = vld [vmem:[%s882_s1 + $0x30] sm:$0xff]  ;;  %v109_v14 = vld [vmem:[%s882_s1 + $0x38] sm:$0xff] }
   0x9   :  { %v240_v11 = vsel %vm224_vm4, 1, %v620_v2  ;;  %v241_v13 = vsel %vm225_vm5, 1, %v620_v2  ;;  %vm226_vm6 = vcmp.ne.s32.totalorder %v108_v12, 4294967196  ;;  %vm227_vm7 = vcmp.ne.s32.totalorder %v109_v14, 4294967196  ;;  %v110_v16 = vld [vmem:[%s882_s1 + $0x40] sm:$0xff]  ;;  %v111_v18 = vld [vmem:[%s882_s1 + $0x48] sm:$0xff] }
   0xa   :  { %256 = vperm.xlu1 %571, %v237_v5   ;;  %253 = vperm.xlu0 %570, %v236_v6   ;;  %v242_v15 = vsel %vm226_vm6, 1, %v620_v2  ;;  %v243_v17 = vsel %vm227_vm7, 1, %v620_v2  ;;  %vm228_vm8 = vcmp.ne.s32.totalorder %v110_v16, 4294967196  ;;  %vm229_vm9 = vcmp.ne.s32.totalorder %v111_v18, 4294967196  ;;  %v112_v20 = vld [vmem:[%s882_s1 + $0x50] sm:$0xff]  ;;  %v113_v22 = vld [vmem:[%s882_s1 + $0x58] sm:$0xff] }
   0xb   :  { %v244_v19 = vsel %vm228_vm8, 1, %v620_v2  ;;  %v245_v21 = vsel %vm229_vm9, 1, %v620_v2  ;;  %vm230_vm10 = vcmp.ne.s32.totalorder %v112_v20, 4294967196  ;;  %vm231_vm11 = vcmp.ne.s32.totalorder %v113_v22, 4294967196  ;;  %v114_v24 = vld [vmem:[%s882_s1 + $0x60] sm:$0xff]  ;;  %v115_v26 = vld [vmem:[%s882_s1 + $0x68] sm:$0xff] }
   0xc   :  { %v246_v23 = vsel %vm230_vm10, 1, %v620_v2  ;;  %v247_v25 = vsel %vm231_vm11, 1, %v620_v2  ;;  %vm232_vm12 = vcmp.ne.s32.totalorder %v114_v24, 4294967196  ;;  %vm233_vm13 = vcmp.ne.s32.totalorder %v115_v26, 4294967196  ;;  %v116_v28 = vld [vmem:[%s882_s1 + $0x70] sm:$0xff]  ;;  %v117_v30 = vld [vmem:[%s882_s1 + $0x78] sm:$0xff] }
   0xd   :  { %v248_v27 = vsel %vm232_vm12, 1, %v620_v2  ;;  %v249_v29 = vsel %vm233_vm13, 1, %v620_v2  ;;  %vm234_vm14 = vcmp.ne.s32.totalorder %v116_v28, 4294967196  ;;  %vm235_vm15 = vcmp.ne.s32.totalorder %v117_v30, 4294967196  ;;  %v87_v46 = vld [vmem:[%s881_s0 + $0x8] sm:$0xff]  ;;  %v86_v47 = vld [vmem:[%s881_s0] sm:$0xff] }
   0xe   :  { %262 = vperm.xlu1 %571, %v239_v8   ;;  %259 = vperm.xlu0 %570, %v238_v9   ;;  %v250_v31 = vsel %vm234_vm14, 1, %v620_v2  ;;  %v251_v32 = vsel %vm235_vm15, 1, %v620_v2  ;;  %vm83_vm0 = vcmask 98304   ;;  %v621_v33 = vmov 0.0   ;;  %v88_v48 = vld [vmem:[%s881_s0 + $0x10] sm:$0xff]  ;;  %v89_v60 = vld [vmem:[%s881_s0 + $0x18] sm:$0xff] }
   0xf   :  { %84 = vst.msk [vmem:[#allocation2] sm:$0x1] %vm83_vm0, %v621_v33  ;;  %85 = vst.msk [vmem:[#allocation4] sm:$0x1] %vm83_vm0, %v621_v33  ;;  %v714_v43 = vand.u32 127, %v118_v40  ;;  %v397_v49 = vsub.f32 0.0, %v87_v46 }
  0x10   :  { %v396_v50 = vsub.f32 0.0, %v86_v47  ;;  %v398_v53 = vsub.f32 0.0, %v88_v48  ;;  %vm445_vm9 = vcmask 105472   ;;  %v90_v63 = vld [vmem:[%s881_s0 + $0x20] sm:$0xff]  ;;  %v399_v4 = vsub.f32 0.0, %v89_v60  ;;  %v91_v5 = vld [vmem:[%s881_s0 + $0x28] sm:$0xff] }
  0x11   :  { %v95_v40 = vld [vmem:[%s881_s0 + $0x48] sm:$0xff]  ;;  %s623_s21 = smov [#allocation4]  }
  0x12   :  { %265 = vperm.xlu1 %571, %v240_v11   ;;  %169 = vperm.xlu0 %570, %v106_v7   ;;  %s542_s22 = sshll.u32 %s623_s21, 4  ;;  %s847_s22 = int_to_ptr.vmem [resolvable:$true] %s542_s22 }
  0x16   :  { %268 = vperm.xlu1 %571, %v241_v13   ;;  %172 = vperm.xlu0 %570, %v107_v10   ;;  %v400_v10 = vsub.f32 0.0, %v90_v63  ;;  %v92_v13 = vld [vmem:[%s881_s0 + $0x30] sm:$0xff] }
  0x1a   :  { %271 = vperm.xlu1 %571, %v242_v15   ;;  %175 = vperm.xlu0 %570, %v108_v12  }
  0x1e   :  { %274 = vperm.xlu1 %571, %v243_v17   ;;  %178 = vperm.xlu0 %570, %v109_v14   ;;  %v401_v14 = vsub.f32 0.0, %v91_v5 }
  0x22   :  { %277 = vperm.xlu1 %571, %v244_v19   ;;  %181 = vperm.xlu0 %570, %v110_v16  }
  0x26   :  { %280 = vperm.xlu1 %571, %v245_v21   ;;  %184 = vperm.xlu0 %570, %v111_v18   ;;  %v402_v21 = vsub.f32 0.0, %v92_v13 }
  0x2a   :  { %283 = vperm.xlu1 %571, %v246_v23   ;;  %187 = vperm.xlu0 %570, %v112_v20  }
  0x2e   :  { %286 = vperm.xlu1 %571, %v247_v25   ;;  %190 = vperm.xlu0 %570, %v113_v22  }
  0x32   :  { %289 = vperm.xlu1 %571, %v248_v27   ;;  %193 = vperm.xlu0 %570, %v114_v24   ;;  %v93_v24 = vld [vmem:[%s881_s0 + $0x38] sm:$0xff]  ;;  %v94_v27 = vld [vmem:[%s881_s0 + $0x40] sm:$0xff] }
  0x36   :  { %292 = vperm.xlu1 %571, %v249_v29   ;;  %196 = vperm.xlu0 %570, %v115_v26  }
  0x3a   :  { %295 = vperm.xlu1 %571, %v250_v31   ;;  %199 = vperm.xlu0 %570, %v116_v28  }
  0x3e   :  { %298 = vperm.xlu1 %571, %v251_v32   ;;  %202 = vperm.xlu0 %570, %v117_v30  }
  0x81   :  { %v164_v34 = vpop.permute.xlu1 %163  ;;  %v158_v35 = vpop.permute.xlu0 %157 }
  0x82   :  { %vm204_vm4 = vcmp.eq.s32.totalorder %v158_v35, %v714_v43  ;;  %vm206_vm8 = vcmp.eq.s32.totalorder %v164_v34, %v714_v43 }
  0x85   :  { %v167_v36 = vpop.permute.xlu1 %166  ;;  %v161_v37 = vpop.permute.xlu0 %160 }
  0x86   :  { %vm205_vm3 = vcmp.eq.s32.totalorder %v161_v37, %v714_v43  ;;  %vm207_vm12 = vcmp.eq.s32.totalorder %v167_v36, %v714_v43  ;;  %v403_v37 = vsub.f32 0.0, %v93_v24 }
  0x89   :  { %v257_v38 = vpop.permute.xlu1 %256  ;;  %v254_v39 = vpop.permute.xlu0 %253 }
  0x8a   :  { %vm301_vm1 = vcmp.eq.s32.totalorder %v257_v38, 1  ;;  %vm300_vm2 = vcmp.eq.s32.totalorder %v254_v39, 1  ;;  %v404_v39 = vsub.f32 0.0, %v94_v27 }
  0x8b   :  { %vm317_vm5 = vmand %vm205_vm3, %vm301_vm1 }
  0x8c   :  { %vm316_vm7 = vmand %vm204_vm4, %vm300_vm2  ;;  %v413_v54 = vsel %vm317_vm5, %v397_v49, 0.0  ;;  %v429_v55 = vsel %vm317_vm5, 1.0, %v621_v33 }
  0x8d   :  { %v263_v41 = vpop.permute.xlu1 %262  ;;  %v260_v42 = vpop.permute.xlu0 %259  ;;  %v412_v56 = vsel %vm316_vm7, %v396_v50, 0.0  ;;  %v428_v57 = vsel %vm316_vm7, 1.0, %v621_v33  ;;  %v447_v0 = vsel %vm445_vm9, %v413_v54, 0.0  ;;  %v488_v1 = vsel %vm445_vm9, %v429_v55, 0.0 }
  0x8e   :  { %vm302_vm6 = vcmp.eq.s32.totalorder %v260_v42, 1  ;;  %vm303_vm11 = vcmp.eq.s32.totalorder %v263_v41, 1  ;;  %v446_v2 = vsel %vm445_vm9, %v412_v56, 0.0  ;;  %v487_v3 = vsel %vm445_vm9, %v428_v57, 0.0 }
  0x8f   :  { %vm318_vm10 = vmand %vm206_vm8, %vm302_vm6  ;;  %v448_v11 = vadd.f32 %v447_v0, %v446_v2  ;;  %v489_v12 = vadd.f32 %v488_v1, %v487_v3  ;;  %v97_v1 = vld [vmem:[%s881_s0 + $0x58] sm:$0xff]  ;;  %v98_v2 = vld [vmem:[%s881_s0 + $0x60] sm:$0xff] }
  0x90   :  { %v414_v61 = vsel %vm318_vm10, %v398_v53, 0.0  ;;  %v430_v62 = vsel %vm318_vm10, 1.0, %v621_v33  ;;  %vm319_vm15 = vmand %vm207_vm12, %vm303_vm11  ;;  %v405_v53 = vsub.f32 0.0, %v95_v40 }
  0x91   :  { %v266_v44 = vpop.permute.xlu1 %265  ;;  %v170_v45 = vpop.permute.xlu0 %169  ;;  %v449_v8 = vsel %vm445_vm9, %v414_v61, 0.0  ;;  %v490_v9 = vsel %vm445_vm9, %v430_v62, 0.0  ;;  %v415_v15 = vsel %vm319_vm15, %v399_v4, 0.0  ;;  %v431_v16 = vsel %vm319_vm15, 1.0, %v621_v33 }
  0x92   :  { %vm304_vm13 = vcmp.eq.s32.totalorder %v266_v44, 1  ;;  %vm208_vm14 = vcmp.eq.s32.totalorder %v170_v45, %v714_v43  ;;  %v450_v17 = vadd.f32 %v449_v8, %v448_v11  ;;  %v491_v18 = vadd.f32 %v490_v9, %v489_v12  ;;  %v96_v44 = vld [vmem:[%s881_s0 + $0x50] sm:$0xff] }
  0x93   :  { %vm320_vm3 = vmand %vm208_vm14, %vm304_vm13  ;;  %v451_v25 = vsel %vm445_vm9, %v415_v15, 0.0  ;;  %v492_v26 = vsel %vm445_vm9, %v431_v16, 0.0  ;;  %v406_v56 = vsub.f32 0.0, %v96_v44  ;;  %v407_v9 = vsub.f32 0.0, %v97_v1 }
  0x94   :  { %v416_v22 = vsel %vm320_vm3, %v400_v10, 0.0  ;;  %v432_v23 = vsel %vm320_vm3, 1.0, %v621_v33  ;;  %v452_v28 = vadd.f32 %v451_v25, %v450_v17  ;;  %v493_v29 = vadd.f32 %v492_v26, %v491_v18  ;;  %v99_v17 = vld [vmem:[%s881_s0 + $0x68] sm:$0xff]  ;;  %v100_v25 = vld [vmem:[%s881_s0 + $0x70] sm:$0xff] }
  0x95   :  { %v269_v51 = vpop.permute.xlu1 %268  ;;  %v173_v52 = vpop.permute.xlu0 %172  ;;  %v453_v35 = vsel %vm445_vm9, %v416_v22, 0.0  ;;  %v494_v36 = vsel %vm445_vm9, %v432_v23, 0.0  ;;  %v408_v10 = vsub.f32 0.0, %v98_v2  ;;  %v409_v24 = vsub.f32 0.0, %v99_v17 }
  0x96   :  { %vm305_vm1 = vcmp.eq.s32.totalorder %v269_v51, 1  ;;  %vm209_vm2 = vcmp.eq.s32.totalorder %v173_v52, %v714_v43  ;;  %v454_v45 = vadd.f32 %v453_v35, %v452_v28  ;;  %v495_v46 = vadd.f32 %v494_v36, %v493_v29 }
  0x97   :  { %vm321_vm4 = vmand %vm209_vm2, %vm305_vm1 }
  0x98   :  { %v417_v30 = vsel %vm321_vm4, %v401_v14, 0.0  ;;  %v433_v31 = vsel %vm321_vm4, 1.0, %v621_v33 }
  0x99   :  { %v272_v58 = vpop.permute.xlu1 %271  ;;  %v176_v59 = vpop.permute.xlu0 %175  ;;  %v455_v41 = vsel %vm445_vm9, %v417_v30, 0.0  ;;  %v496_v42 = vsel %vm445_vm9, %v433_v31, 0.0 }
  0x9a   :  { %vm306_vm5 = vcmp.eq.s32.totalorder %v272_v58, 1  ;;  %vm210_vm6 = vcmp.eq.s32.totalorder %v176_v59, %v714_v43  ;;  %v456_v54 = vadd.f32 %v455_v41, %v454_v45  ;;  %v497_v55 = vadd.f32 %v496_v42, %v495_v46  ;;  %v101_v42 = vld [vmem:[%s881_s0 + $0x78] sm:$0xff]  ;;  %s622_s0 = smov [#allocation2]  }
  0x9b   :  { %vm322_vm10 = vmand %vm210_vm6, %vm306_vm5  ;;  %s532_s20 = sshll.u32 %s622_s0, 4  ;;  %s533_s20 = int_to_ptr.vmem [resolvable:$true] %s532_s20 }
  0x9c   :  { %v418_v47 = vsel %vm322_vm10, %v402_v21, 0.0  ;;  %v434_v48 = vsel %vm322_vm10, 1.0, %v621_v33  ;;  %s572_s23 = scalar_lea.vmem %s533_s20, 16  ;;  %s576_s24 = scalar_lea.vmem %s533_s20, 32 }
  0x9d   :  { %v275_v6 = vpop.permute.xlu1 %274  ;;  %v179_v7 = vpop.permute.xlu0 %178  ;;  %v457_v57 = vsel %vm445_vm9, %v418_v47, 0.0  ;;  %v498_v58 = vsel %vm445_vm9, %v434_v48, 0.0  ;;  %p573_p0 = scmp.ne.s32.totalorder %s533_s20, %s572_s23  ;;  %p577_p1 = scmp.lt.s32.totalorder %s533_s20, %s533_s20 }
  0x9e   :  { %vm307_vm7 = vcmp.eq.s32.totalorder %v275_v6, 1  ;;  %vm211_vm8 = vcmp.eq.s32.totalorder %v179_v7, %v714_v43  ;;  %v458_v5 = vadd.f32 %v457_v57, %v456_v54  ;;  %v499_v6 = vadd.f32 %v498_v58, %v497_v55  ;;  %p578_p2 = scmp.lt.s32.totalorder %s576_s24, %s572_s23 }
  0x9f   :  { %vm771_vm11 = vmand %vm211_vm8, %vm307_vm7 }
  0xa0   :  { %v419_v51 = vsel %vm771_vm11, %v403_v37, 0.0  ;;  %v435_v52 = vsel %vm771_vm11, 1.0, %v621_v33  ;;  %v410_v37 = vsub.f32 0.0, %v100_v25  ;;  %p579_p3 = por %p578_p2, %p577_p1 }
  0xa1   :  { %v278_v19 = vpop.permute.xlu1 %277  ;;  %v182_v20 = vpop.permute.xlu0 %181  ;;  %v459_v59 = vsel %vm445_vm9, %v419_v51, 0.0  ;;  %v500_v60 = vsel %vm445_vm9, %v435_v52, 0.0  ;;  %v411_v52 = vsub.f32 0.0, %v101_v42 }
  0xa2   :  { %vm308_vm12 = vcmp.eq.s32.totalorder %v278_v19, 1  ;;  %vm212_vm13 = vcmp.eq.s32.totalorder %v182_v20, %v714_v43  ;;  %v460_v11 = vadd.f32 %v459_v59, %v458_v5  ;;  %v501_v12 = vadd.f32 %v500_v60, %v499_v6  ;;  %p580_p4 = pnand %p579_p3, %p573_p0 }
  0xa3   :  { %vm324_vm1 = vmand %vm212_vm13, %vm308_vm12 }
  0xa4   :  { %v420_v61 = vsel %vm324_vm1, %v404_v39, 0.0  ;;  %v436_v62 = vsel %vm324_vm1, 1.0, %v621_v33 }
  0xa5   :  { %v281_v32 = vpop.permute.xlu1 %280  ;;  %v185_v34 = vpop.permute.xlu0 %184  ;;  %v461_v7 = vsel %vm445_vm9, %v420_v61, 0.0  ;;  %v502_v8 = vsel %vm445_vm9, %v436_v62, 0.0 }
  0xa6   :  { %vm309_vm14 = vcmp.eq.s32.totalorder %v281_v32, 1  ;;  %vm213_vm15 = vcmp.eq.s32.totalorder %v185_v34, %v714_v43  ;;  %v462_v20 = vadd.f32 %v461_v7, %v460_v11  ;;  %v503_v21 = vadd.f32 %v502_v8, %v501_v12 }
  0xa7   :  { %vm325_vm2 = vmand %vm213_vm15, %vm309_vm14 }
  0xa8   :  { %v421_v3 = vsel %vm325_vm2, %v405_v53, 0.0  ;;  %v437_v4 = vsel %vm325_vm2, 1.0, %v621_v33 }
  0xa9   :  { %v284_v49 = vpop.permute.xlu1 %283  ;;  %v188_v50 = vpop.permute.xlu0 %187  ;;  %v463_v13 = vsel %vm445_vm9, %v421_v3, 0.0  ;;  %v504_v14 = vsel %vm445_vm9, %v437_v4, 0.0 }
  0xaa   :  { %vm310_vm3 = vcmp.eq.s32.totalorder %v284_v49, 1  ;;  %vm214_vm4 = vcmp.eq.s32.totalorder %v188_v50, %v714_v43  ;;  %v464_v26 = vadd.f32 %v463_v13, %v462_v20  ;;  %v505_v27 = vadd.f32 %v504_v14, %v503_v21 }
  0xab   :  { %vm326_vm7 = vmand %vm214_vm4, %vm310_vm3 }
  0xac   :  { %v422_v18 = vsel %vm326_vm7, %v406_v56, 0.0  ;;  %v438_v19 = vsel %vm326_vm7, 1.0, %v621_v33 }
  0xad   :  { %v287_v63 = vpop.permute.xlu1 %286  ;;  %v191_v0 = vpop.permute.xlu0 %190  ;;  %v465_v28 = vsel %vm445_vm9, %v422_v18, 0.0  ;;  %v506_v29 = vsel %vm445_vm9, %v438_v19, 0.0 }
  0xae   :  { %vm311_vm5 = vcmp.eq.s32.totalorder %v287_v63, 1  ;;  %vm215_vm6 = vcmp.eq.s32.totalorder %v191_v0, %v714_v43  ;;  %v466_v38 = vadd.f32 %v465_v28, %v464_v26  ;;  %v507_v39 = vadd.f32 %v506_v29, %v505_v27 }
  0xaf   :  { %vm327_vm8 = vmand %vm215_vm6, %vm311_vm5 }
  0xb0   :  { %v423_v22 = vsel %vm327_vm8, %v407_v9, 0.0  ;;  %v439_v23 = vsel %vm327_vm8, 1.0, %v621_v33 }
  0xb1   :  { %v290_v15 = vpop.permute.xlu1 %289  ;;  %v194_v16 = vpop.permute.xlu0 %193  ;;  %v467_v35 = vsel %vm445_vm9, %v423_v22, 0.0  ;;  %v508_v36 = vsel %vm445_vm9, %v439_v23, 0.0 }
  0xb2   :  { %vm312_vm10 = vcmp.eq.s32.totalorder %v290_v15, 1  ;;  %vm216_vm11 = vcmp.eq.s32.totalorder %v194_v16, %v714_v43  ;;  %v468_v48 = vadd.f32 %v467_v35, %v466_v38  ;;  %v509_v49 = vadd.f32 %v508_v36, %v507_v39  ;;  %v444_v16 = vld [vmem:[#allocation2] sm:$0x1] }
  0xb3   :  { %vm328_vm12 = vmand %vm216_vm11, %vm312_vm10 }
  0xb4   :  { %v424_v32 = vsel %vm328_vm12, %v408_v10, 0.0  ;;  %v440_v34 = vsel %vm328_vm12, 1.0, %v621_v33 }
  0xb5   :  { %v293_v30 = vpop.permute.xlu1 %292  ;;  %v197_v31 = vpop.permute.xlu0 %196  ;;  %v469_v44 = vsel %vm445_vm9, %v424_v32, 0.0  ;;  %v510_v45 = vsel %vm445_vm9, %v440_v34, 0.0 }
  0xb6   :  { %vm313_vm13 = vcmp.eq.s32.totalorder %v293_v30, 1  ;;  %vm217_vm14 = vcmp.eq.s32.totalorder %v197_v31, %v714_v43  ;;  %v470_v53 = vadd.f32 %v469_v44, %v468_v48  ;;  %v511_v54 = vadd.f32 %v510_v45, %v509_v49 }
  0xb7   :  { %vm329_vm15 = vmand %vm217_vm14, %vm313_vm13 }
  0xb8   :  { %v425_v40 = vsel %vm329_vm15, %v409_v24, 0.0  ;;  %v441_v41 = vsel %vm329_vm15, 1.0, %v621_v33 }
  0xb9   :  { %v296_v46 = vpop.permute.xlu1 %295  ;;  %v200_v47 = vpop.permute.xlu0 %199  ;;  %v471_v50 = vsel %vm445_vm9, %v425_v40, 0.0  ;;  %v512_v51 = vsel %vm445_vm9, %v441_v41, 0.0 }
  0xba   :  { %vm314_vm1 = vcmp.eq.s32.totalorder %v296_v46, 1  ;;  %vm218_vm2 = vcmp.eq.s32.totalorder %v200_v47, %v714_v43  ;;  %v472_v61 = vadd.f32 %v471_v50, %v470_v53  ;;  %v513_v62 = vadd.f32 %v512_v51, %v511_v54 }
  0xbb   :  { %vm330_vm3 = vmand %vm218_vm2, %vm314_vm1 }
  0xbc   :  { %v426_v55 = vsel %vm330_vm3, %v410_v37, 0.0  ;;  %v442_v56 = vsel %vm330_vm3, 1.0, %v621_v33 }
  0xbd   :  { %v473_v57 = vsel %vm445_vm9, %v426_v55, 0.0  ;;  %v514_v58 = vsel %vm445_vm9, %v442_v56, 0.0  ;;  %v299_v59 = vpop.permute.xlu1 %298  ;;  %v203_v60 = vpop.permute.xlu0 %202 }
  0xbe   :  { %vm315_vm4 = vcmp.eq.s32.totalorder %v299_v59, 1  ;;  %vm219_vm5 = vcmp.eq.s32.totalorder %v203_v60, %v714_v43  ;;  %v474_v63 = vadd.f32 %v473_v57, %v472_v61  ;;  %v515_v0 = vadd.f32 %v514_v58, %v513_v62 }
  0xbf   :  { %vm331_vm6 = vmand %vm219_vm5, %vm315_vm4 }
  0xc0   :  { %v427_v1 = vsel %vm331_vm6, %v411_v52, 0.0  ;;  %v443_v2 = vsel %vm331_vm6, 1.0, %v621_v33  ;;  %v486_v33 = vld [vmem:[#allocation4] sm:$0x1] }
  0xc1   :  { %v475_v3 = vsel %vm445_vm9, %v427_v1, 0.0  ;;  %v516_v4 = vsel %vm445_vm9, %v443_v2, 0.0 }
  0xc2   :  { %v476_v5 = vadd.f32 %v475_v3, %v474_v63  ;;  %v517_v6 = vadd.f32 %v516_v4, %v515_v0 }
  0xc4   :  { %v477_v7 = vrot.slane %v476_v5, 4  ;;  %v518_v8 = vrot.slane %v517_v6, 4 }
  0xc6   :  { %v478_v9 = vadd.f32 %v477_v7, %v476_v5  ;;  %v519_v10 = vadd.f32 %v518_v8, %v517_v6 }
  0xc8   :  { %v479_v11 = vrot.slane %v478_v9, 2  ;;  %v520_v12 = vrot.slane %v519_v10, 2 }
  0xca   :  { %v480_v13 = vadd.f32 %v479_v11, %v478_v9  ;;  %v521_v43 = vadd.f32 %v520_v12, %v519_v10 }
  0xcc   :  { %v522_v14 = vrot.slane %v521_v43, 1  ;;  %v481_v15 = vrot.slane %v480_v13, 1 }
  0xce   :  { %v482_v17 = vadd.f32 %v481_v15, %v480_v13  ;;  %v523_v18 = vadd.f32 %v522_v14, %v521_v43 }
  0xd0   :  { %v483_v19 = vadd.f32 %v482_v17, %v444_v16  ;;  %v524_v20 = vadd.f32 %v523_v18, %v486_v33 }
  0xd2   :  { %485 = vst.msk [vmem:[#allocation2] sm:$0x1] %vm83_vm0, %v483_v19  ;;  %525 = vst.msk [vmem:[#allocation4] sm:$0x1] %vm83_vm0, %v524_v20 }
  0xd3   :  { %583 = shalt.err (!%p580_p4)
}
  0xd4   :  { %s584_s27 = scalar_lea.hbm %s883_s2, 16 }
  0xd5   :  { %p585_p5 = scmp.ne.s32.totalorder %s883_s2, %s584_s27  ;;  %p588_p6 = scmp.lt.u32.totalorder %s584_s27, %s883_s2 }
  0xd7   :  { %p590_p7 = pnand %p588_p6, %p585_p5 }
  0xd9   :  { %593 = shalt.err (!%p590_p7)
}
  0xda   :  { %535 = dma.vmem_to_hbm [thread:$0]  %s533_s20, 16, %s883_s2, [#allocation3]  }
  0xdb   :  { %s594_s7 = scalar_lea.vmem %s847_s22, 16  ;;  %s598_s8 = scalar_lea.vmem %s847_s22, 32 }
  0xdc   :  { %p595_p8 = scmp.ne.s32.totalorder %s847_s22, %s594_s7  ;;  %p599_p9 = scmp.lt.s32.totalorder %s847_s22, %s847_s22 }
  0xdd   :  { %p600_p10 = scmp.lt.s32.totalorder %s598_s8, %s594_s7 }
  0xdf   :  { %p601_p11 = por %p600_p10, %p599_p9 }
  0xe1   :  { %p602_p12 = pnand %p601_p11, %p595_p8 }
  0xe3   :  { %605 = shalt.err (!%p602_p12)
}
  0xe4   :  { %s606_s11 = scalar_lea.hbm %s884_s3, 16 }
  0xe5   :  { %p607_p13 = scmp.ne.s32.totalorder %s884_s3, %s606_s11  ;;  %p610_p0 = scmp.lt.u32.totalorder %s606_s11, %s884_s3 }
  0xe7   :  { %p612_p1 = pnand %p610_p0, %p607_p13 }
  0xe9   :  { %615 = shalt.err (!%p612_p1)
}
  0xea   :  { %545 = dma.vmem_to_hbm [thread:$0]  %s847_s22, 16, %s884_s3, [#allocation5]  }
  0xeb   :  { %616 = dma.done.wait [#allocation3], 16  }
  0xec   :  { %617 = vsyncadd [#allocation3], 4294967280 }
  0xed   :  { %618 = dma.done.wait [#allocation5], 16  }
  0xee   :  { %619 = vsyncadd [#allocation5], 4294967280 }
  0xef   :  { %552 = vsyncpa [#allocation3], 1 }
  0xf0   :  { %553 = vsyncpa [#allocation5], 1 }

</bundles_post_ra>
